<compile_context>
chip_gen: v7x
topology: tpu7x:2x2x1
jax: 0.10.0
libtpu: 0.0.40
codegen_flags: <defaults>
</compile_context>

<pallas_src>
import jax
import jax.numpy as jnp
from jax.experimental import pallas as pl
from jax.experimental.pallas import tpu as pltpu

_LANES = 128  # TPU vreg lane width


def _alpha_kernel(pre_alpha_ref, out_ref):
    x = pre_alpha_ref[...].astype(jnp.float32)   # f32 compute path (v5e-safe)
    alpha = 1.0 + jax.nn.sigmoid(x)
    # sigmoid <= 1  =>  alpha <= 2, so the max=2 clamp is redundant (bit-identical).
    out_ref[...] = jnp.maximum(alpha, 1.01).astype(out_ref.dtype)


def alpha_chooser(pre_alpha: jax.Array) -> jax.Array:
    """Compute clamp(1 + sigmoid(pre_alpha), 1.01, 2) via a Pallas TPU kernel.

    pre_alpha: (head_count,) float array
    returns:   (head_count,) array of the same dtype
    """
    head_count = pre_alpha.shape[0]
    # Lane-dense (1, P) slab, P = head_count rounded up to a multiple of 128.
    padded = pl.cdiv(head_count, _LANES) * _LANES
    x2d = jnp.pad(pre_alpha, (0, padded - head_count)).reshape(1, padded)

    out = pl.pallas_call(
        _alpha_kernel,
        out_shape=jax.ShapeDtypeStruct((1, padded), pre_alpha.dtype),
        in_specs=[pl.BlockSpec(memory_space=pltpu.MemorySpace.VMEM)],
        out_specs=pl.BlockSpec(memory_space=pltpu.MemorySpace.VMEM),
    )(x2d)
    return out[0, :head_count]


if __name__ == "__main__":
    head_count = 8
    key = jax.random.PRNGKey(0)
    # Deterministic "parameter" init, matching torch.randn(head_count) semantics.
    pre_alpha = jax.random.normal(key, (head_count,), dtype=jnp.float32)

    alpha = alpha_chooser(pre_alpha)
    alpha = jax.block_until_ready(alpha)

    # Reference check in plain JAX (full clamp, as in the PyTorch module).
    ref = jnp.clip(1.0 + jax.nn.sigmoid(pre_alpha), 1.01, 2.0)
    assert alpha.shape == (head_count,)
    assert alpha.dtype == pre_alpha.dtype
    assert jnp.allclose(alpha, ref, atol=1e-6), (alpha, ref)
    assert bool(jnp.all(alpha >= 1.01)) and bool(jnp.all(alpha <= 2.0))

    print("KERNEL_OK")
</pallas_src>

<mosaic_0001>
module attributes {stable_mosaic.version = 11 : i64} {
  func.func @_alpha_kernel(%arg0: memref<1x128xf32, #tpu.memory_space<vmem>>, %arg1: memref<1x128xf32, #tpu.memory_space<vmem>>) attributes {dimension_semantics = [], scalar_prefetch = 0 : i64, scratch_operands = 0 : i64, tpu.core_type = #tpu.core_type<tc>} {
    %c0 = arith.constant 0 : index
    %c0_0 = arith.constant 0 : index
    %0 = vector.load %arg0[%c0, %c0_0] : memref<1x128xf32, #tpu.memory_space<vmem>>, vector<1x128xf32>
    %1 = arith.negf %0 : vector<1x128xf32>
    %2 = math.exp %1 : vector<1x128xf32>
    %cst = arith.constant 1.000000e+00 : f32
    %3 = vector.broadcast %cst : f32 to vector<1x128xf32>
    %4 = arith.addf %3, %2 : vector<1x128xf32>
    %5 = arith.divf %3, %4 : vector<1x128xf32>
    %cst_1 = arith.constant 1.000000e+00 : f32
    %6 = vector.broadcast %cst_1 : f32 to vector<1x128xf32>
    %7 = arith.addf %6, %5 : vector<1x128xf32>
    %cst_2 = arith.constant 1.010000e+00 : f32
    %8 = vector.broadcast %cst_2 : f32 to vector<1x128xf32>
    %9 = arith.maximumf %7, %8 : vector<1x128xf32>
    %c0_3 = arith.constant 0 : index
    %c0_4 = arith.constant 0 : index
    %10 = vector.load %arg1[%c0_3, %c0_4] : memref<1x128xf32, #tpu.memory_space<vmem>>, vector<1x128xf32>
    tpu.vector_store %arg1[%c0_3, %c0_4], %9 {strides = array<i32>} : memref<1x128xf32, #tpu.memory_space<vmem>>, vector<1x128xf32>,
    return
  }
}

</mosaic_0001>

<bundles_post_ra>
// kernel: tpu_custom_call.1
= control target key start
LH: loop header
LB: loop body
LE: loop exit
PB: predicated region body
PF: predicated region fallthrough
CT: control target
= control target key end

     0   :  { %6 = vsyncpa [#allocation3], 0  ;;  %s137_s0 = inlined_call_operand.hbm [shape: f32[1,128], index: 0, kind: input, shape index: {}]   ;;  %s138_s1 = inlined_call_operand.hbm [shape: f32[1,128], index: 1, kind: output, shape index: {}]  }
   0x1   :  { %7 = vsyncpa [#allocation4], 0  ;;  %s101_s6 = smov [#allocation2]   ;;  %s53_s10 = scalar_lea.hbm %s137_s0, 16 }
   0x2   :  { %s14_s7 = sshll.u32 %s101_s6, 4  ;;  %p54_p0 = scmp.ne.s32.totalorder %s137_s0, %s53_s10  ;;  %s15_s7 = int_to_ptr.vmem [resolvable:$true] %s14_s7 }
   0x3   :  { %p57_p1 = scmp.lt.u32.totalorder %s53_s10, %s137_s0 }
   0x5   :  { %p59_p2 = pnand %p57_p1, %p54_p0 }
   0x7   :  { %62 = shalt.err (!%p59_p2)
}
   0x8   :  { %s63_s15 = scalar_lea.vmem %s15_s7, 16  ;;  %s67_s16 = scalar_lea.vmem %s15_s7, 32 }
   0x9   :  { %p64_p3 = scmp.ne.s32.totalorder %s15_s7, %s63_s15  ;;  %p68_p4 = scmp.lt.s32.totalorder %s15_s7, %s15_s7 }
   0xa   :  { %p69_p5 = scmp.lt.s32.totalorder %s67_s16, %s63_s15 }
   0xc   :  { %p70_p6 = por %p69_p5, %p68_p4 }
   0xe   :  { %p71_p7 = pnand %p70_p6, %p64_p3 }
  0x10   :  { %74 = shalt.err (!%p71_p7)
}
  0x11   :  { %17 = dma.hbm_to_vmem [thread:$0]  %s137_s0, 16, %s15_s7, [#allocation3]  }
  0x12   :  { %97 = dma.done.wait [#allocation3], 16  }
  0x13   :  { %98 = vsyncadd [#allocation3], 4294967280  ;;  %v21_v0 = vld [vmem:[#allocation2] sm:$0x1]  ;;  %s102_s19 = smov [#allocation5]  }
  0x14   :  { %v46_v1 = vmul.f32 -1.442695, %v21_v0  ;;  %s37_s20 = sshll.u32 %s102_s19, 4  ;;  %s38_s20 = int_to_ptr.vmem [resolvable:$true] %s37_s20 }
  0x15   :  { %s75_s21 = scalar_lea.vmem %s38_s20, 16  ;;  %s79_s22 = scalar_lea.vmem %s38_s20, 32 }
  0x16   :  { %49 = vpow2.f32 %v46_v1  ;;  %p76_p8 = scmp.ne.s32.totalorder %s38_s20, %s75_s21  ;;  %p80_p9 = scmp.lt.s32.totalorder %s38_s20, %s38_s20 }
  0x17   :  { %p81_p10 = scmp.lt.s32.totalorder %s79_s22, %s75_s21 }
  0x19   :  { %p82_p11 = por %p81_p10, %p80_p9 }
  0x1b   :  { %p83_p12 = pnand %p82_p11, %p76_p8 }
  0x20   :  { %v50_v2 = vpop.eup %49 }
  0x21   :  { %v25_v3 = vadd.f32 1.0, %v50_v2 }
  0x23   :  { %51 = vrcp.f32 %v25_v3 }
  0x2d   :  { %v52_v4 = vpop.eup %51 }
  0x2e   :  { %v28_v5 = vadd.f32 1.0, %v52_v4 }
  0x30   :  { %v29_v6 = vmax.f32 %v28_v5, 1.01 }
  0x32   :  { %30 = vst [vmem:[#allocation5] sm:$0x1] %v29_v6 }
  0x33   :  { %86 = shalt.err (!%p83_p12)
}
  0x34   :  { %s87_s24 = scalar_lea.hbm %s138_s1, 16 }
  0x35   :  { %p88_p13 = scmp.ne.s32.totalorder %s138_s1, %s87_s24  ;;  %p91_p0 = scmp.lt.u32.totalorder %s87_s24, %s138_s1 }
  0x37   :  { %p93_p1 = pnand %p91_p0, %p88_p13 }
  0x39   :  { %96 = shalt.err (!%p93_p1)
}
  0x3a   :  { %40 = dma.vmem_to_hbm [thread:$0]  %s38_s20, 16, %s138_s1, [#allocation4]  }
  0x3b   :  { %99 = dma.done.wait [#allocation4], 16  }
  0x3c   :  { %100 = vsyncadd [#allocation4], 4294967280 }
  0x3d   :  { %44 = vsyncpa [#allocation3], 1 }
  0x3e   :  { %45 = vsyncpa [#allocation4], 1 }

</bundles_post_ra>
